<compile_context>
chip_gen: v7x
topology: tpu7x:2x2x1
jax: 0.10.0
libtpu: 0.0.40
codegen_flags: <defaults>
</compile_context>

<pallas_src>
import functools

import jax
import jax.numpy as jnp
from jax import lax
from jax.experimental import pallas as pl
from jax.experimental.pallas import tpu as pltpu


def _channel_groups(c_blk):
    """Split a channel block into groups of 8 (one f32 sublane tile) plus a
    remainder group, so register-resident partials stay small."""
    groups = [(g * 8, 8) for g in range(c_blk // 8)]
    if c_blk % 8:
        groups.append(((c_blk // 8) * 8, c_blk % 8))
    return groups


def _pick_unroll(n_chunks):
    for u in (8, 4, 2):
        if n_chunks % u == 0:
            return u
    return 1


def _pkd_sse_kernel(s_ref, t_ref, sse_ref,
                    acc_s, acc_t, acc_ss, acc_tt, acc_st,
                    *, total_m, c_blk, lane_dense,
                    full_chunks, tail_chunks, tail_partial, single_hw_step,
                    eps):
    """Streams (c_blk, hw_blk) tiles of S and T, accumulating one-pass
    per-channel statistics; finalizes sum((norm(S)-norm(T))**2) per channel."""
    n_i = pl.program_id(1)
    hw_i = pl.program_id(2)
    last_n = pl.num_programs(1) - 1
    last_hw = pl.num_programs(2) - 1

    @pl.when((n_i == 0) & (hw_i == 0))
    def _init():
        acc_s[...] = jnp.zeros_like(acc_s)
        acc_t[...] = jnp.zeros_like(acc_t)
        acc_ss[...] = jnp.zeros_like(acc_ss)
        acc_tt[...] = jnp.zeros_like(acc_tt)
        acc_st[...] = jnp.zeros_like(acc_st)

    if lane_dense:
        def accumulate(n_chunks, n_partial):
            # Lane-dense fast path: register accumulation over 128-lane chunks
            # per 8-channel group, then one VMEM read-modify-write per group.
            # No cross-lane reduces, no narrow masked stores on the hot path.
            for c0, cn in _channel_groups(c_blk):
                zero = jnp.zeros((cn, 128), jnp.float32)
                carry = (zero, zero, zero, zero, zero)

                def body(j, carry, _c0=c0, _cn=cn):
                    ps, pt, pss, ptt, pst = carry
                    off = pl.multiple_of(j * 128, 128)
                    sj = s_ref[pl.ds(_c0, _cn), pl.ds(off, 128)].astype(jnp.float32)
                    tj = t_ref[pl.ds(_c0, _cn), pl.ds(off, 128)].astype(jnp.float32)
                    return (ps + sj, pt + tj, pss + sj * sj,
                            ptt + tj * tj, pst + sj * tj)

                if n_chunks > 0:
                    carry = lax.fori_loop(0, n_chunks, body, carry,
                                          unroll=_pick_unroll(n_chunks))
                ps, pt, pss, ptt, pst = carry

                if n_partial:
                    # Single ragged chunk: mask is compile-time static.
                    off = n_chunks * 128
                    sj = s_ref[pl.ds(c0, cn), pl.ds(off, 128)].astype(jnp.float32)
                    tj = t_ref[pl.ds(c0, cn), pl.ds(off, 128)].astype(jnp.float32)
                    lane = jax.lax.broadcasted_iota(jnp.int32, (cn, 128), 1)
                    valid = lane < n_partial
                    sj = jnp.where(valid, sj, 0.0)
                    tj = jnp.where(valid, tj, 0.0)
                    ps = ps + sj
                    pt = pt + tj
                    pss = pss + sj * sj
                    ptt = ptt + tj * tj
                    pst = pst + sj * tj

                acc_s[c0:c0 + cn, :] += ps
                acc_t[c0:c0 + cn, :] += pt
                acc_ss[c0:c0 + cn, :] += pss
                acc_tt[c0:c0 + cn, :] += ptt
                acc_st[c0:c0 + cn, :] += pst

        if single_hw_step or (tail_chunks == full_chunks and tail_partial == 0):
            # Every HW tile has the same (static) chunk structure.
            accumulate(tail_chunks, tail_partial)
        else:
            # Unmasked fast path for all full tiles; only the HW tail tile
            # takes the (statically bounded) partially-masked path.
            @pl.when(hw_i != last_hw)
            def _full_tiles():
                accumulate(full_chunks, 0)

            @pl.when(hw_i == last_hw)
            def _tail_tile():
                accumulate(tail_chunks, tail_partial)
    else:
        # Tiny spatial extent (< 128): one full-HW tile per step; the direct
        # cross-lane reduce is negligible here.
        s = s_ref[...].astype(jnp.float32)
        t = t_ref[...].astype(jnp.float32)
        acc_s[...] += jnp.sum(s, axis=1, keepdims=True)
        acc_t[...] += jnp.sum(t, axis=1, keepdims=True)
        acc_ss[...] += jnp.sum(s * s, axis=1, keepdims=True)
        acc_tt[...] += jnp.sum(t * t, axis=1, keepdims=True)
        acc_st[...] += jnp.sum(s * t, axis=1, keepdims=True)

    @pl.when((n_i == last_n) & (hw_i == last_hw))
    def _finalize():
        # The only cross-lane reduction: once per channel block.
        sum_s = jnp.sum(acc_s[...], axis=1, keepdims=True)
        sum_t = jnp.sum(acc_t[...], axis=1, keepdims=True)
        sum_ss = jnp.sum(acc_ss[...], axis=1, keepdims=True)
        sum_tt = jnp.sum(acc_tt[...], axis=1, keepdims=True)
        sum_st = jnp.sum(acc_st[...], axis=1, keepdims=True)
        m = jnp.float32(total_m)
        mu_s = sum_s / m
        mu_t = sum_t / m
        # TODO(synk): one-pass (Σx² − m·μ²) can lose precision vs. the two-pass
        # PyTorch reference when per-channel means are large relative to std.
        css = jnp.maximum(sum_ss - m * mu_s * mu_s, 0.0)
        ctt = jnp.maximum(sum_tt - m * mu_t * mu_t, 0.0)
        cst = sum_st - m * mu_s * mu_t
        denom = jnp.float32(max(total_m - 1, 1))   # torch.std is unbiased (ddof=1)
        inv_s = 1.0 / (jnp.sqrt(css / denom) + jnp.float32(eps))
        inv_t = 1.0 / (jnp.sqrt(ctt / denom) + jnp.float32(eps))
        # sum((norm(S) - norm(T))**2) per channel, algebraically.
        sse_ref[...] = (css * inv_s * inv_s + ctt * inv_t * inv_t
                        - 2.0 * cst * inv_s * inv_t)


def _pick_blocks(c, hw, itemsize):
    """Choose (c_blk, hw_blk, lane_dense).

    Preferences: (1) hw_blk spans the (128-rounded) spatial extent so each
    (n, channel-slab) block is one big contiguous-row DMA; (2) >= 2 channel
    grid blocks so v7x's two TensorCores both get work; (3) block bytes
    ~<= 4 MiB (dtype aware); (4) hw_blk a multiple of 128 so accumulation is
    lane-dense and only a static tail chunk ever needs masking."""
    target_bytes = 4 << 20
    max_elems = max(target_bytes // itemsize, 8 * 128)

    cb_cands = [cb for cb in (32, 16, 8) if c % cb == 0] or [c]

    if hw < 128:
        cb = next((cb for cb in cb_cands if c // cb >= 2), cb_cands[0])
        return cb, hw, False

    hw128 = (hw // 128) * 128
    for cb in cb_cands:                       # full-HW blocks, >= 2 channel blocks
        if c // cb >= 2 and cb * hw128 <= max_elems:
            return cb, hw128, True
    for cb in cb_cands:                       # full-HW blocks, single channel block
        if cb * hw128 <= max_elems:
            return cb, hw128, True
    # Spatial extent too large even for the smallest channel block: split HW.
    cb = cb_cands[-1]
    cap = max(128, (max_elems // cb) // 128 * 128)
    hw_blk = next((b for b in range(cap, 127, -128) if hw128 % b == 0), cap)
    return cb, hw_blk, True


def _pkd_level_sse(s3d, t3d):
    """Sum over channels of sum((norm(S_c) - norm(T_c))**2) for one level."""
    n, c, hw = s3d.shape
    itemsize = jnp.dtype(s3d.dtype).itemsize
    c_blk, hw_blk, lane_dense = _pick_blocks(c, hw, itemsize)

    grid_hw = pl.cdiv(hw, hw_blk)
    tail_valid = hw - (grid_hw - 1) * hw_blk          # valid lanes in last HW tile
    kernel = functools.partial(
        _pkd_sse_kernel,
        total_m=n * hw,
        c_blk=c_blk,
        lane_dense=lane_dense,
        full_chunks=hw_blk // 128,
        tail_chunks=tail_valid // 128,
        tail_partial=tail_valid % 128,
        single_hw_step=(grid_hw == 1),
        eps=1e-6,
    )
    acc_w = 128 if lane_dense else 1
    grid = (c // c_blk, n, grid_hw)

    sse = pl.pallas_call(
        kernel,
        out_shape=jax.ShapeDtypeStruct((c, 1), jnp.float32),
        grid_spec=pltpu.PrefetchScalarGridSpec(
            num_scalar_prefetch=0,
            grid=grid,
            in_specs=[
                pl.BlockSpec((None, c_blk, hw_blk), lambda ci, ni, hi: (ni, ci, hi)),
                pl.BlockSpec((None, c_blk, hw_blk), lambda ci, ni, hi: (ni, ci, hi)),
            ],
            out_specs=pl.BlockSpec((c_blk, 1), lambda ci, ni, hi: (ci, 0)),
            scratch_shapes=[pltpu.VMEM((c_blk, acc_w), jnp.float32)] * 5,
        ),
        compiler_params=pltpu.CompilerParams(
            dimension_semantics=("parallel", "arbitrary", "arbitrary"),
            vmem_limit_bytes=32 * 1024 * 1024),
        cost_estimate=pl.CostEstimate(
            flops=int(8 * n * c * hw),
            transcendentals=int(2 * c),
            bytes_accessed=int(2 * n * c * hw * itemsize + c * 4)),
    )(s3d, t3d)
    return jnp.sum(sse)


def pkd_loss(preds_S, preds_T, loss_weight=1.0, resize_stu=True):
    """JAX/Pallas equivalent of PKDLoss.forward.

    preds_S / preds_T: a single (N, C, H, W) array or a tuple of them.
    """
    if not isinstance(preds_S, (tuple, list)):
        preds_S, preds_T = (preds_S,), (preds_T,)

    loss = jnp.float32(0.0)
    for pS, pT in zip(preds_S, preds_T):
        size_S, size_T = pS.shape[2:], pT.shape[2:]
        if size_S[0] != size_T[0]:
            # TODO(synk): jax.image.resize(antialias=False) closely matches
            # F.interpolate(mode='bilinear', align_corners=False) but is not
            # guaranteed bit-identical.
            if resize_stu:
                pS = jax.image.resize(pS, pS.shape[:2] + tuple(size_T),
                                      method="bilinear", antialias=False)
            else:
                pT = jax.image.resize(pT, pT.shape[:2] + tuple(size_S),
                                      method="bilinear", antialias=False)
        assert pS.shape == pT.shape
        N, C, H, W = pS.shape
        # Free reshape (no HBM transpose): per-channel statistics are computed
        # in-kernel while streaming over (channel-block, batch, HW-tile).
        s3d = pS.reshape(N, C, H * W)
        t3d = pT.reshape(N, C, H * W)
        sse = _pkd_level_sse(s3d, t3d)
        # F.mse_loss: mean over all N*C*H*W elements, then /2 per PKD.
        loss = loss + sse / jnp.float32(C * N * H * W) / 2.0
    return loss * jnp.float32(loss_weight)


def _ref_pkd_loss(preds_S, preds_T, loss_weight=1.0, resize_stu=True):
    """Pure-JAX two-pass reference (mirrors the PyTorch module)."""
    if not isinstance(preds_S, (tuple, list)):
        preds_S, preds_T = (preds_S,), (preds_T,)

    def _norm(x):
        n, c, h, w = x.shape
        f = jnp.transpose(x, (1, 0, 2, 3)).reshape(c, -1)
        mean = f.mean(axis=-1, keepdims=True)
        std = jnp.sqrt(jnp.sum((f - mean) ** 2, axis=-1, keepdims=True)
                       / (f.shape[1] - 1))
        return (f - mean) / (std + 1e-6)

    loss = jnp.float32(0.0)
    for pS, pT in zip(preds_S, preds_T):
        size_S, size_T = pS.shape[2:], pT.shape[2:]
        if size_S[0] != size_T[0]:
            if resize_stu:
                pS = jax.image.resize(pS, pS.shape[:2] + tuple(size_T),
                                      method="bilinear", antialias=False)
            else:
                pT = jax.image.resize(pT, pT.shape[:2] + tuple(size_S),
                                      method="bilinear", antialias=False)
        loss = loss + jnp.mean((_norm(pS) - _norm(pT)) ** 2) / 2.0
    return loss * jnp.float32(loss_weight)


if __name__ == "__main__":
    key = jax.random.PRNGKey(0)
    k1, k2, k3, k4 = jax.random.split(key, 4)

    # Single-tensor path.
    N, C, H, W = 2, 4, 16, 16
    sA = jax.random.normal(k1, (N, C, H, W), dtype=jnp.float32)
    tA = jax.random.normal(k2, (N, C, H, W), dtype=jnp.float32)
    loss_a = pkd_loss(sA, tA, loss_weight=1.0)
    jax.block_until_ready(loss_a)
    ref_a = _ref_pkd_loss(sA, tA, loss_weight=1.0)
    assert jnp.allclose(loss_a, ref_a, rtol=1e-4, atol=1e-5), (loss_a, ref_a)

    # Multi-level tuple path with a spatial-size mismatch (exercises resize).
    sB = jax.random.normal(k3, (2, 8, 8, 8), dtype=jnp.float32)
    tB = jax.random.normal(k4, (2, 8, 16, 16), dtype=jnp.float32)
    loss_b = pkd_loss((sA, sB), (tA, tB), loss_weight=0.5, resize_stu=True)
    jax.block_until_ready(loss_b)
    ref_b = _ref_pkd_loss((sA, sB), (tA, tB), loss_weight=0.5, resize_stu=True)
    assert jnp.allclose(loss_b, ref_b, rtol=1e-4, atol=1e-5), (loss_b, ref_b)

    print("KERNEL_OK")
</pallas_src>

<mosaic_0001>
module attributes {stable_mosaic.version = 11 : i64} {
  func.func @_pkd_sse_kernel(%arg0: i32, %arg1: i32, %arg2: i32, %arg3: memref<1x4x256xf32, #tpu.memory_space<vmem>>, %arg4: memref<1x4x256xf32, #tpu.memory_space<vmem>>, %arg5: memref<4x1xf32, #tpu.memory_space<vmem>>, %arg6: memref<4x128xf32, #tpu.memory_space<vmem>>, %arg7: memref<4x128xf32, #tpu.memory_space<vmem>>, %arg8: memref<4x128xf32, #tpu.memory_space<vmem>>, %arg9: memref<4x128xf32, #tpu.memory_space<vmem>>, %arg10: memref<4x128xf32, #tpu.memory_space<vmem>>) attributes {dimension_semantics = [#tpu.dimension_semantics<parallel>, #tpu.dimension_semantics<arbitrary>, #tpu.dimension_semantics<arbitrary>], iteration_bounds = array<i64: 1, 2, 1>, scalar_prefetch = 0 : i64, scratch_operands = 5 : i64, tpu.core_type = #tpu.core_type<tc>, window_params = [{transform_indices = @transform_0, window_bounds = array<i64: 1, 4, 256>}, {transform_indices = @transform_1, window_bounds = array<i64: 1, 4, 256>}, {transform_indices = @transform_2, window_bounds = array<i64: 4, 1>}]} {
    %c0_i32 = arith.constant 0 : i32
    %0 = arith.cmpi eq, %arg1, %c0_i32 : i32
    %c0_i32_0 = arith.constant 0 : i32
    %1 = arith.cmpi eq, %arg2, %c0_i32_0 : i32
    %2 = arith.andi %0, %1 : i1
    %3 = arith.extui %2 : i1 to i32
    %c0_i32_1 = arith.constant 0 : i32
    %4 = arith.cmpi ne, %3, %c0_i32_1 : i32
    scf.if %4 {
      %cst_34 = arith.constant 0.000000e+00 : f32
      %58 = vector.broadcast %cst_34 : f32 to vector<4x128xf32>
      %c0_35 = arith.constant 0 : index
      %c0_36 = arith.constant 0 : index
      %59 = vector.load %arg6[%c0_35, %c0_36] : memref<4x128xf32, #tpu.memory_space<vmem>>, vector<4x128xf32>
      tpu.vector_store %arg6[%c0_35, %c0_36], %58 {strides = array<i32>} : memref<4x128xf32, #tpu.memory_space<vmem>>, vector<4x128xf32>,
      %cst_37 = arith.constant 0.000000e+00 : f32
      %60 = vector.broadcast %cst_37 : f32 to vector<4x128xf32>
      %c0_38 = arith.constant 0 : index
      %c0_39 = arith.constant 0 : index
      %61 = vector.load %arg7[%c0_38, %c0_39] : memref<4x128xf32, #tpu.memory_space<vmem>>, vector<4x128xf32>
      tpu.vector_store %arg7[%c0_38, %c0_39], %60 {strides = array<i32>} : memref<4x128xf32, #tpu.memory_space<vmem>>, vector<4x128xf32>,
      %cst_40 = arith.constant 0.000000e+00 : f32
      %62 = vector.broadcast %cst_40 : f32 to vector<4x128xf32>
      %c0_41 = arith.constant 0 : index
      %c0_42 = arith.constant 0 : index
      %63 = vector.load %arg8[%c0_41, %c0_42] : memref<4x128xf32, #tpu.memory_space<vmem>>, vector<4x128xf32>
      tpu.vector_store %arg8[%c0_41, %c0_42], %62 {strides = array<i32>} : memref<4x128xf32, #tpu.memory_space<vmem>>, vector<4x128xf32>,
      %cst_43 = arith.constant 0.000000e+00 : f32
      %64 = vector.broadcast %cst_43 : f32 to vector<4x128xf32>
      %c0_44 = arith.constant 0 : index
      %c0_45 = arith.constant 0 : index
      %65 = vector.load %arg9[%c0_44, %c0_45] : memref<4x128xf32, #tpu.memory_space<vmem>>, vector<4x128xf32>
      tpu.vector_store %arg9[%c0_44, %c0_45], %64 {strides = array<i32>} : memref<4x128xf32, #tpu.memory_space<vmem>>, vector<4x128xf32>,
      %cst_46 = arith.constant 0.000000e+00 : f32
      %66 = vector.broadcast %cst_46 : f32 to vector<4x128xf32>
      %c0_47 = arith.constant 0 : index
      %c0_48 = arith.constant 0 : index
      %67 = vector.load %arg10[%c0_47, %c0_48] : memref<4x128xf32, #tpu.memory_space<vmem>>, vector<4x128xf32>
      tpu.vector_store %arg10[%c0_47, %c0_48], %66 {strides = array<i32>} : memref<4x128xf32, #tpu.memory_space<vmem>>, vector<4x128xf32>,
    } else {
    }
    %cst = arith.constant 0.000000e+00 : f32
    %5 = vector.broadcast %cst : f32 to vector<4x128xf32>
    %c0_i32_2 = arith.constant 0 : i32
    %c128_i32 = arith.constant 128 : i32
    %6 = arith.muli %c0_i32_2, %c128_i32 : i32
    %7 = tpu.assume_multiple %6, 128 : i32
    %c0 = arith.constant 0 : index
    %c0_3 = arith.constant 0 : index
    %8 = arith.index_cast %7 : i32 to index
    %9 = vector.load %arg3[%c0, %c0_3, %8] : memref<1x4x256xf32, #tpu.memory_space<vmem>>, vector<1x4x128xf32>
    %10 = vector.shape_cast %9 : vector<1x4x128xf32> to vector<4x128xf32>
    %c0_4 = arith.constant 0 : index
    %c0_5 = arith.constant 0 : index
    %11 = arith.index_cast %7 : i32 to index
    %12 = vector.load %arg4[%c0_4, %c0_5, %11] : memref<1x4x256xf32, #tpu.memory_space<vmem>>, vector<1x4x128xf32>
    %13 = vector.shape_cast %12 : vector<1x4x128xf32> to vector<4x128xf32>
    %14 = arith.addf %5, %10 : vector<4x128xf32>
    %15 = arith.addf %5, %13 : vector<4x128xf32>
    %16 = arith.mulf %10, %10 : vector<4x128xf32>
    %17 = arith.addf %5, %16 : vector<4x128xf32>
    %18 = arith.mulf %13, %13 : vector<4x128xf32>
    %19 = arith.addf %5, %18 : vector<4x128xf32>
    %20 = arith.mulf %10, %13 : vector<4x128xf32>
    %21 = arith.addf %5, %20 : vector<4x128xf32>
    %c1_i32 = arith.constant 1 : i32
    %c128_i32_6 = arith.constant 128 : i32
    %22 = arith.muli %c1_i32, %c128_i32_6 : i32
    %23 = tpu.assume_multiple %22, 128 : i32
    %c0_7 = arith.constant 0 : index
    %c0_8 = arith.constant 0 : index
    %24 = arith.index_cast %23 : i32 to index
    %25 = vector.load %arg3[%c0_7, %c0_8, %24] : memref<1x4x256xf32, #tpu.memory_space<vmem>>, vector<1x4x128xf32>
    %26 = vector.shape_cast %25 : vector<1x4x128xf32> to vector<4x128xf32>
    %c0_9 = arith.constant 0 : index
    %c0_10 = arith.constant 0 : index
    %27 = arith.index_cast %23 : i32 to index
    %28 = vector.load %arg4[%c0_9, %c0_10, %27] : memref<1x4x256xf32, #tpu.memory_space<vmem>>, vector<1x4x128xf32>
    %29 = vector.shape_cast %28 : vector<1x4x128xf32> to vector<4x128xf32>
    %30 = arith.addf %14, %26 : vector<4x128xf32>
    %31 = arith.addf %15, %29 : vector<4x128xf32>
    %32 = arith.mulf %26, %26 : vector<4x128xf32>
    %33 = arith.addf %17, %32 : vector<4x128xf32>
    %34 = arith.mulf %29, %29 : vector<4x128xf32>
    %35 = arith.addf %19, %34 : vector<4x128xf32>
    %36 = arith.mulf %26, %29 : vector<4x128xf32>
    %37 = arith.addf %21, %36 : vector<4x128xf32>
    %c2_i32 = arith.constant 2 : i32
    %c0_11 = arith.constant 0 : index
    %c0_12 = arith.constant 0 : index
    %38 = vector.load %arg6[%c0_11, %c0_12] : memref<4x128xf32, #tpu.memory_space<vmem>>, vector<4x128xf32>
    %39 = arith.addf %38, %30 : vector<4x128xf32>
    %c0_13 = arith.constant 0 : index
    %c0_14 = arith.constant 0 : index
    %40 = vector.load %arg6[%c0_13, %c0_14] : memref<4x128xf32, #tpu.memory_space<vmem>>, vector<4x128xf32>
    tpu.vector_store %arg6[%c0_13, %c0_14], %39 {strides = array<i32>} : memref<4x128xf32, #tpu.memory_space<vmem>>, vector<4x128xf32>,
    %c0_15 = arith.constant 0 : index
    %c0_16 = arith.constant 0 : index
    %41 = vector.load %arg7[%c0_15, %c0_16] : memref<4x128xf32, #tpu.memory_space<vmem>>, vector<4x128xf32>
    %42 = arith.addf %41, %31 : vector<4x128xf32>
    %c0_17 = arith.constant 0 : index
    %c0_18 = arith.constant 0 : index
    %43 = vector.load %arg7[%c0_17, %c0_18] : memref<4x128xf32, #tpu.memory_space<vmem>>, vector<4x128xf32>
    tpu.vector_store %arg7[%c0_17, %c0_18], %42 {strides = array<i32>} : memref<4x128xf32, #tpu.memory_space<vmem>>, vector<4x128xf32>,
    %c0_19 = arith.constant 0 : index
    %c0_20 = arith.constant 0 : index
    %44 = vector.load %arg8[%c0_19, %c0_20] : memref<4x128xf32, #tpu.memory_space<vmem>>, vector<4x128xf32>
    %45 = arith.addf %44, %33 : vector<4x128xf32>
    %c0_21 = arith.constant 0 : index
    %c0_22 = arith.constant 0 : index
    %46 = vector.load %arg8[%c0_21, %c0_22] : memref<4x128xf32, #tpu.memory_space<vmem>>, vector<4x128xf32>
    tpu.vector_store %arg8[%c0_21, %c0_22], %45 {strides = array<i32>} : memref<4x128xf32, #tpu.memory_space<vmem>>, vector<4x128xf32>,
    %c0_23 = arith.constant 0 : index
    %c0_24 = arith.constant 0 : index
    %47 = vector.load %arg9[%c0_23, %c0_24] : memref<4x128xf32, #tpu.memory_space<vmem>>, vector<4x128xf32>
    %48 = arith.addf %47, %35 : vector<4x128xf32>
    %c0_25 = arith.constant 0 : index
    %c0_26 = arith.constant 0 : index
    %49 = vector.load %arg9[%c0_25, %c0_26] : memref<4x128xf32, #tpu.memory_space<vmem>>, vector<4x128xf32>
    tpu.vector_store %arg9[%c0_25, %c0_26], %48 {strides = array<i32>} : memref<4x128xf32, #tpu.memory_space<vmem>>, vector<4x128xf32>,
    %c0_27 = arith.constant 0 : index
    %c0_28 = arith.constant 0 : index
    %50 = vector.load %arg10[%c0_27, %c0_28] : memref<4x128xf32, #tpu.memory_space<vmem>>, vector<4x128xf32>
    %51 = arith.addf %50, %37 : vector<4x128xf32>
    %c0_29 = arith.constant 0 : index
    %c0_30 = arith.constant 0 : index
    %52 = vector.load %arg10[%c0_29, %c0_30] : memref<4x128xf32, #tpu.memory_space<vmem>>, vector<4x128xf32>
    tpu.vector_store %arg10[%c0_29, %c0_30], %51 {strides = array<i32>} : memref<4x128xf32, #tpu.memory_space<vmem>>, vector<4x128xf32>,
    %c1_i32_31 = arith.constant 1 : i32
    %53 = arith.cmpi eq, %arg1, %c1_i32_31 : i32
    %c0_i32_32 = arith.constant 0 : i32
    %54 = arith.cmpi eq, %arg2, %c0_i32_32 : i32
    %55 = arith.andi %53, %54 : i1
    %56 = arith.extui %55 : i1 to i32
    %c0_i32_33 = arith.constant 0 : i32
    %57 = arith.cmpi ne, %56, %c0_i32_33 : i32
    scf.if %57 {
      %c0_34 = arith.constant 0 : index
      %c0_35 = arith.constant 0 : index
      %58 = vector.load %arg6[%c0_34, %c0_35] : memref<4x128xf32, #tpu.memory_space<vmem>>, vector<4x128xf32>
      %cst_36 = arith.constant dense<0.000000e+00> : vector<4xf32>
      %59 = vector.multi_reduction <add>, %58, %cst_36 [1] : vector<4x128xf32> to vector<4xf32>
      %60 = vector.shape_cast %59 : vector<4xf32> to vector<4x1xf32>
      %c0_37 = arith.constant 0 : index
      %c0_38 = arith.constant 0 : index
      %61 = vector.load %arg7[%c0_37, %c0_38] : memref<4x128xf32, #tpu.memory_space<vmem>>, vector<4x128xf32>
      %cst_39 = arith.constant dense<0.000000e+00> : vector<4xf32>
      %62 = vector.multi_reduction <add>, %61, %cst_39 [1] : vector<4x128xf32> to vector<4xf32>
      %63 = vector.shape_cast %62 : vector<4xf32> to vector<4x1xf32>
      %c0_40 = arith.constant 0 : index
      %c0_41 = arith.constant 0 : index
      %64 = vector.load %arg8[%c0_40, %c0_41] : memref<4x128xf32, #tpu.memory_space<vmem>>, vector<4x128xf32>
      %cst_42 = arith.constant dense<0.000000e+00> : vector<4xf32>
      %65 = vector.multi_reduction <add>, %64, %cst_42 [1] : vector<4x128xf32> to vector<4xf32>
      %66 = vector.shape_cast %65 : vector<4xf32> to vector<4x1xf32>
      %c0_43 = arith.constant 0 : index
      %c0_44 = arith.constant 0 : index
      %67 = vector.load %arg9[%c0_43, %c0_44] : memref<4x128xf32, #tpu.memory_space<vmem>>, vector<4x128xf32>
      %cst_45 = arith.constant dense<0.000000e+00> : vector<4xf32>
      %68 = vector.multi_reduction <add>, %67, %cst_45 [1] : vector<4x128xf32> to vector<4xf32>
      %69 = vector.shape_cast %68 : vector<4xf32> to vector<4x1xf32>
      %c0_46 = arith.constant 0 : index
      %c0_47 = arith.constant 0 : index
      %70 = vector.load %arg10[%c0_46, %c0_47] : memref<4x128xf32, #tpu.memory_space<vmem>>, vector<4x128xf32>
      %cst_48 = arith.constant dense<0.000000e+00> : vector<4xf32>
      %71 = vector.multi_reduction <add>, %70, %cst_48 [1] : vector<4x128xf32> to vector<4xf32>
      %72 = vector.shape_cast %71 : vector<4xf32> to vector<4x1xf32>
      %cst_49 = arith.constant 5.120000e+02 : f32
      %73 = vector.broadcast %cst_49 : f32 to vector<4x1xf32>
      %74 = arith.divf %60, %73 : vector<4x1xf32>
      %cst_50 = arith.constant 5.120000e+02 : f32
      %75 = vector.broadcast %cst_50 : f32 to vector<4x1xf32>
      %76 = arith.divf %63, %75 : vector<4x1xf32>
      %cst_51 = arith.constant 5.120000e+02 : f32
      %77 = vector.broadcast %cst_51 : f32 to vector<4x1xf32>
      %78 = arith.mulf %77, %74 : vector<4x1xf32>
      %79 = arith.mulf %78, %74 : vector<4x1xf32>
      %80 = arith.subf %66, %79 : vector<4x1xf32>
      %cst_52 = arith.constant 0.000000e+00 : f32
      %81 = vector.broadcast %cst_52 : f32 to vector<4x1xf32>
      %82 = arith.maximumf %80, %81 : vector<4x1xf32>
      %cst_53 = arith.constant 5.120000e+02 : f32
      %83 = vector.broadcast %cst_53 : f32 to vector<4x1xf32>
      %84 = arith.mulf %83, %76 : vector<4x1xf32>
      %85 = arith.mulf %84, %76 : vector<4x1xf32>
      %86 = arith.subf %69, %85 : vector<4x1xf32>
      %cst_54 = arith.constant 0.000000e+00 : f32
      %87 = vector.broadcast %cst_54 : f32 to vector<4x1xf32>
      %88 = arith.maximumf %86, %87 : vector<4x1xf32>
      %cst_55 = arith.constant 5.120000e+02 : f32
      %89 = vector.broadcast %cst_55 : f32 to vector<4x1xf32>
      %90 = arith.mulf %89, %74 : vector<4x1xf32>
      %91 = arith.mulf %90, %76 : vector<4x1xf32>
      %92 = arith.subf %72, %91 : vector<4x1xf32>
      %cst_56 = arith.constant 5.110000e+02 : f32
      %93 = vector.broadcast %cst_56 : f32 to vector<4x1xf32>
      %94 = arith.divf %82, %93 : vector<4x1xf32>
      %95 = math.sqrt %94 : vector<4x1xf32>
      %cst_57 = arith.constant 9.99999997E-7 : f32
      %96 = vector.broadcast %cst_57 : f32 to vector<4x1xf32>
      %97 = arith.addf %95, %96 : vector<4x1xf32>
      %cst_58 = arith.constant 1.000000e+00 : f32
      %98 = vector.broadcast %cst_58 : f32 to vector<4x1xf32>
      %99 = arith.divf %98, %97 : vector<4x1xf32>
      %cst_59 = arith.constant 5.110000e+02 : f32
      %100 = vector.broadcast %cst_59 : f32 to vector<4x1xf32>
      %101 = arith.divf %88, %100 : vector<4x1xf32>
      %102 = math.sqrt %101 : vector<4x1xf32>
      %cst_60 = arith.constant 9.99999997E-7 : f32
      %103 = vector.broadcast %cst_60 : f32 to vector<4x1xf32>
      %104 = arith.addf %102, %103 : vector<4x1xf32>
      %cst_61 = arith.constant 1.000000e+00 : f32
      %105 = vector.broadcast %cst_61 : f32 to vector<4x1xf32>
      %106 = arith.divf %105, %104 : vector<4x1xf32>
      %107 = arith.mulf %82, %99 : vector<4x1xf32>
      %108 = arith.mulf %107, %99 : vector<4x1xf32>
      %109 = arith.mulf %88, %106 : vector<4x1xf32>
      %110 = arith.mulf %109, %106 : vector<4x1xf32>
      %111 = arith.addf %108, %110 : vector<4x1xf32>
      %cst_62 = arith.constant 2.000000e+00 : f32
      %112 = vector.broadcast %cst_62 : f32 to vector<4x1xf32>
      %113 = arith.mulf %112, %92 : vector<4x1xf32>
      %114 = arith.mulf %113, %99 : vector<4x1xf32>
      %115 = arith.mulf %114, %106 : vector<4x1xf32>
      %116 = arith.subf %111, %115 : vector<4x1xf32>
      %c0_63 = arith.constant 0 : index
      %c0_64 = arith.constant 0 : index
      %117 = vector.load %arg5[%c0_63, %c0_64] : memref<4x1xf32, #tpu.memory_space<vmem>>, vector<4x1xf32>
      tpu.vector_store %arg5[%c0_63, %c0_64], %116 {strides = array<i32>} : memref<4x1xf32, #tpu.memory_space<vmem>>, vector<4x1xf32>,
    } else {
    }
    return
  }
  func.func @transform_0(%arg0: i32, %arg1: i32, %arg2: i32) -> (i32, i32, i32) {
    %c0_i32 = arith.constant 0 : i32
    return %arg1, %arg0, %arg2 : i32, i32, i32
  }
  func.func @transform_1(%arg0: i32, %arg1: i32, %arg2: i32) -> (i32, i32, i32) {
    %c0_i32 = arith.constant 0 : i32
    return %arg1, %arg0, %arg2 : i32, i32, i32
  }
  func.func @transform_2(%arg0: i32, %arg1: i32, %arg2: i32) -> (i32, i32) {
    %c0_i32 = arith.constant 0 : i32
    %c0_i32_0 = arith.constant 0 : i32
    return %arg0, %c0_i32 : i32, i32
  }
}

</mosaic_0001>

<bundles_post_ra>
// kernel: tpu_custom_call.1
= control target key start
LH: loop header
LB: loop body
LE: loop exit
PB: predicated region body
PF: predicated region fallthrough
CT: control target
= control target key end

     0   :  { %7 = vsyncpa [#allocation8], 0  ;;  %s860_s0 = inlined_call_operand.hbm [shape: f32[2,4,256], index: 0, kind: input, shape index: {}]   ;;  %s861_s1 = inlined_call_operand.hbm [shape: f32[2,4,256], index: 1, kind: input, shape index: {}]   ;;  %s862_s2 = inlined_call_operand.vmem [shape: f32[4,1], index: 2, kind: output, shape index: {}]  }
   0x1   :  { %9 = vsyncpa [#allocation8 + $0x1], 0 }
   0x2   :  { %10 = vsyncpa [#allocation10], 0 }
   0x3   :  { %12 = vsyncpa [#allocation10 + $0x1], 0  ;;  %s688_s9 = smov 0   ;;  %s690_s10 = smov 0  }
   0x4   :  { %s692_s11 = smov 0   ;;  %s694_s12 = smov 0  }
   0x5   :  { %s696_s13 = smov 0   ;;  %s698_s14 = smov 0  }
   0x6 LB: > { %s462_s15 = sadd.s32 4294967295, %s668_s14   ;;  %s33_s16 = sadd.s32 1, %s664_s13  ;;  %s668_s14 = sphi %s698_s14, %s18_s14   ;;  %s664_s13 = sphi %s696_s13, %s876_s13   ;;  %s660_s12 = sphi %s694_s12, %s875_s12   ;;  %s656_s11 = sphi %s692_s11, %s874_s11   ;;  %s652_s10 = sphi %s690_s10, %s873_s10   ;;  %s648_s9 = sphi %s688_s9, %s872_s9  }
   0x7   : > { %p35_p0 = scmp.ge.s32.totalorder %s33_s16, 2  ;;  %s48_s17 = sadd.s32 1, %s656_s11 }
   0x8   : > { %p55_p1 = scmp.ne.s32.totalorder %s656_s11, %s652_s10  ;;  %p56_p2 = scmp.eq.s32.totalorder %s668_s14, 0 }
   0x9   : > { %s878_s16 = smov (%p35_p0, %s33_s16), 0  ;;  %p61_p4 = scmp.ne.s32.totalorder %s652_s10, %s648_s9 }
   0xa   : > { %p724_p3 = por %p56_p2, %p55_p1  ;;  %s41_s19 = ssub.s32 %s664_s13, %s878_s16 }
   0xb   : > { %p62_p5 = scmp.eq.s32.totalorder %s462_s15, 0  ;;  %p46_p6 = scmp.eq.s32.totalorder %s41_s19, 0 }
   0xc   : > { %p496_p8 = scmp.lt.s32.totalorder %s668_s14, 2  ;;  %s740_s22 = sand.u32 1, %s656_s11  }
   0xd   : > { %p731_p7 = por %p62_p5, %p61_p4  ;;  %s481_s23 = sshll.u32 %s664_s13, 7 }
   0xe   : > { %s737_s21 = scalar_select %p46_p6, %s656_s11, %s48_s17  }
   0xf   : > { %s865_s20 = scalar_select %p731_p7, 1, 0 }
  0x10   : > { %s465_s24 = sshll.u32 %s740_s22, 3  ;;  %s749_s27 = scalar_lea.hbm %s860_s0, %s481_s23 }
  0x11   : > { %s145_s28 = scalar_lea.vmem [#allocation7], %s465_s24  ;;  %p755_p9 = pnand %p496_p8, %p724_p3 }
  0x12   : > { %s157_s29 = sshll.u32 %s145_s28, 4  ;;  %s142_s3 = scalar_lea.sflag [#allocation8], %s740_s22  ;;  %s759_s29 = int_to_ptr.vmem [resolvable:$true] %s157_s29 }
  0x13   : > { %s554_s4 = scalar_lea.hbm %s749_s27, 128  ;;  %p556_p13 = pneg %p755_p9 }
  0x14   : > { %p555_p12 = scmp.ne.s32.totalorder %s749_s27, %s554_s4  ;;  %s559_s7 = scalar_lea.hbm %s860_s0, 256 }
  0x15   : > { %p560_p2 = scmp.lt.u32.totalorder %s749_s27, %s860_s0  ;;  %p561_p3 = scmp.lt.u32.totalorder %s559_s7, %s554_s4 }
  0x16   : > { %p557_p0 = pnand %p556_p13, %p555_p12  ;;  %p563_p5 = scmp.lt.u32.totalorder %s554_s4, %s749_s27 }
  0x17   : > { %p562_p4 = por %p561_p3, %p560_p2 }
  0x18   : > { %p558_p1 = pneg %p557_p0 }
  0x19   : > { %p564_p6 = por %p563_p5, %p562_p4 }
  0x1b   : > { %p565_p8 = pnand %p564_p6, %p558_p1 }
  0x1d   : > { %568 = shalt.err (!%p565_p8)
}
  0x1e   : > { %s569_s15 = scalar_lea.vmem %s759_s29, 128  ;;  %s670_s17 = smov [#allocation7]  }
  0x1f   : > { %p570_p12 = scmp.ne.s32.totalorder %s759_s29, %s569_s15  ;;  %s574_s18 = sshll.u32 %s670_s17, 4  ;;  %s575_s18 = int_to_ptr.vmem [resolvable:$false] %s574_s18 }
  0x20   : > { %s576_s19 = scalar_lea.vmem %s575_s18, 256  ;;  %p577_p11 = scmp.lt.s32.totalorder %s759_s29, %s575_s18 }
  0x21   : > { %p572_p0 = pnand %p570_p12, %p556_p13  ;;  %p578_p2 = scmp.lt.s32.totalorder %s576_s19, %s569_s15 }
  0x23   : > { %p573_p10 = pneg %p572_p0  ;;  %p579_p3 = por %p578_p2, %p577_p11 }
  0x25   : > { %p580_p4 = pnand %p579_p3, %p573_p10 }
  0x27   : > { %583 = shalt.err (!%p580_p4)
}
  0x28   : > { %492 = dma.hbm_to_vmem [thread:$0]  (!%p755_p9), %s749_s27, 128, %s759_s29, %s142_s3  }
  0x29   : > { %p867_p1 = scmp.lt.s32.totalorder %s668_s14, 3  ;;  %p868_p5 = scmp.ge.s32.totalorder %s668_s14, 1 }
  0x2a   : > { %s802_s4 = scalar_lea.hbm %s861_s1, %s481_s23  ;;  %s168_s5 = scalar_lea.vmem [#allocation9], %s465_s24 }
  0x2b   : > { %p793_p6 = pnand %p868_p5, %p867_p1  ;;  %s180_s6 = sshll.u32 %s168_s5, 4  ;;  %s181_s6 = int_to_ptr.vmem [resolvable:$true] %s180_s6 }
  0x2c   : > { %s165_s27 = scalar_lea.sflag [#allocation10], %s740_s22  ;;  %s584_s29 = scalar_lea.hbm %s802_s4, 128 }
  0x2d   : > { %s869_s25 = scalar_select %p793_p6, 1, 0 }
  0x2e   : > { %p585_p10 = scmp.ne.s32.totalorder %s802_s4, %s584_s29  ;;  %s589_s23 = scalar_lea.hbm %s861_s1, 256 }
  0x2f   : > { %p590_p12 = scmp.lt.u32.totalorder %s802_s4, %s861_s1  ;;  %p591_p0 = scmp.lt.u32.totalorder %s589_s23, %s584_s29 }
  0x30   : > { %p587_p11 = pnand %p585_p10, %p556_p13  ;;  %p593_p3 = scmp.lt.u32.totalorder %s584_s29, %s802_s4 }
  0x31   : > { %p592_p2 = por %p591_p0, %p590_p12 }
  0x32   : > { %p588_p8 = pneg %p587_p11 }
  0x33   : > { %p594_p4 = por %p593_p3, %p592_p2 }
  0x35   : > { %p595_p1 = pnand %p594_p4, %p588_p8 }
  0x37   : > { %598 = shalt.err (!%p595_p1)
}
  0x38   : > { %s599_s22 = scalar_lea.vmem %s181_s6, 128  ;;  %s671_s24 = smov [#allocation9]  }
  0x39   : > { %p600_p5 = scmp.ne.s32.totalorder %s181_s6, %s599_s22  ;;  %s604_s15 = sshll.u32 %s671_s24, 4  ;;  %s605_s15 = int_to_ptr.vmem [resolvable:$false] %s604_s15 }
  0x3a   : > { %s606_s17 = scalar_lea.vmem %s605_s15, 256  ;;  %p607_p7 = scmp.lt.s32.totalorder %s181_s6, %s605_s15 }
  0x3b   : > { %p602_p10 = pnand %p600_p5, %p556_p13  ;;  %p608_p6 = scmp.lt.s32.totalorder %s606_s17, %s599_s22 }
  0x3d   : > { %p603_p11 = pneg %p602_p10  ;;  %p609_p0 = por %p608_p6, %p607_p7 }
  0x3f   : > { %p610_p12 = pnand %p609_p0, %p603_p11 }
  0x41   : > { %613 = shalt.err (!%p610_p12)
}
  0x42   : > { %495 = dma.hbm_to_vmem [thread:$0]  (!%p755_p9), %s802_s4, 128, %s181_s6, %s165_s27  }
  0x43   : > { %p870_p8 = scmp.ne.s32.totalorder %s869_s25, 0 }
  0x44   : > { %s191_s18 = sand.u32 (!%p870_p8), 1, %s652_s10   ;;  %p871_p13 = scmp.ne.s32.totalorder (!%p870_p8), %s865_s20, 0 }
  0x45   : > { %189 = sbr.rel (%p870_p8) target bundleno = 297 (0x129), region = 28  ;;  %s472_s19 = sshll.u32 (!%p870_p8), %s191_s18, 3 }
  0x46   : > { %s192_s26 = scalar_lea.sflag (!%p870_p8), [#allocation8], %s191_s18  ;;  %s195_s28 = scalar_lea.vmem (!%p870_p8), [#allocation7], %s472_s19 }
  0x4c   : > { %639 = dma.done.wait (%p871_p13), %s192_s26, 128  }
  0x4d   : > { %641 = vsyncadd (%p871_p13), %s192_s26, 4294967168  ;;  %s201_s5 = scalar_lea.sflag [#allocation10], %s191_s18  ;;  %s204_s29 = scalar_lea.vmem [#allocation9], %s472_s19 }
  0x4e   : > { %643 = dma.done.wait (%p871_p13), %s201_s5, 128  }
  0x4f   : > { %645 = vsyncadd (%p871_p13), %s201_s5, 4294967168  ;;  %p235_p7 = scmp.eq.s32.totalorder %s660_s12, 0 }
  0x50   : > { %v672_v0 = vmov (%p235_p7), 0.0  }
  0x51   : > { %240 = sbr.rel (!%p235_p7) target bundleno = 88 (0x58), region = 40  ;;  %241 = vst [vmem:[#allocation2] sm:$0xf] (%p235_p7), %v672_v0  ;;  %242 = vst [vmem:[#allocation3] sm:$0xf] (%p235_p7), %v672_v0 }
  0x52   : > { %243 = vst [vmem:[#allocation4] sm:$0xf] (%p235_p7), %v672_v0  ;;  %244 = vst [vmem:[#allocation5] sm:$0xf] (%p235_p7), %v672_v0 }
  0x53   : > { %245 = vst [vmem:[#allocation6] sm:$0xf] (%p235_p7), %v672_v0 }
  0x58 PF: > { %v246_v1 = vld [vmem:[%s195_s28] sm:$0xf]  ;;  %v475_v2 = vld [vmem:[%s195_s28 + $0x4] sm:$0xf]  ;;  %v247_v5 = vld [vmem:[%s204_s29] sm:$0xf] }
  0x59   : > { %v268_v3 = vld [vmem:[#allocation2] sm:$0xf]  ;;  %v260_v4 = vadd.f32 %v475_v2, %v246_v1  ;;  %v476_v6 = vld [vmem:[%s204_s29 + $0x4] sm:$0xf]  ;;  %v271_v7 = vld [vmem:[#allocation3] sm:$0xf]  ;;  %v250_v8 = vmul.f32 %v246_v1, %v246_v1  ;;  %v262_v9 = vmul.f32 %v475_v2, %v475_v2  ;;  %v252_v12 = vmul.f32 %v247_v5, %v247_v5 }
  0x5a   : > { %v261_v10 = vadd.f32 %v476_v6, %v247_v5  ;;  %v274_v11 = vld [vmem:[#allocation4] sm:$0xf]  ;;  %v264_v13 = vmul.f32 %v476_v6, %v476_v6  ;;  %v254_v14 = vmul.f32 %v247_v5, %v246_v1  ;;  %v277_v17 = vld [vmem:[#allocation5] sm:$0xf]  ;;  %v266_v18 = vmul.f32 %v476_v6, %v475_v2  ;;  %p283_p9 = scmp.eq.s32.totalorder %s660_s12, 1 }
  0x5b   : > { %v269_v15 = vadd.f32 %v268_v3, %v260_v4  ;;  %v263_v16 = vadd.f32 %v262_v9, %v250_v8  ;;  %v280_v21 = vld [vmem:[#allocation6] sm:$0xf]  ;;  %vm289_vm0 = vcmask (%p283_p9), 1043456   ;;  %vm354_vm5 = vcmask (%p283_p9), 3072  }
  0x5c   : > { %v272_v19 = vadd.f32 %v271_v7, %v261_v10  ;;  %v265_v20 = vadd.f32 %v264_v13, %v252_v12  ;;  %v267_v23 = vadd.f32 %v266_v18, %v254_v14  ;;  %287 = sbr.rel (!%p283_p9) target bundleno = 297 (0x129), region = 44 }
  0x5d   : > { %270 = vst [vmem:[#allocation2] sm:$0xf] %v269_v15  ;;  %v275_v22 = vadd.f32 %v274_v11, %v263_v16 }
  0x5e   : > { %273 = vst [vmem:[#allocation3] sm:$0xf] %v272_v19  ;;  %v278_v24 = vadd.f32 %v277_v17, %v265_v20  ;;  %v281_v25 = vadd.f32 %v280_v21, %v267_v23 }
  0x5f   : > { %276 = vst [vmem:[#allocation4] sm:$0xf] %v275_v22 }
  0x60   : > { %279 = vst [vmem:[#allocation5] sm:$0xf] %v278_v24  ;;  %282 = vst [vmem:[#allocation6] sm:$0xf] %v281_v25 }
  0x64   : > { %v288_v26 = vld [vmem:[#allocation2] sm:$0xf] }
  0x65   : > { %v293_v27 = vld [vmem:[#allocation3] sm:$0xf]  ;;  %v290_v28 = vsel %vm289_vm0, %v288_v26, 0.0 }
  0x66   : > { %v297_v29 = vld [vmem:[#allocation4] sm:$0xf]  ;;  %291 = vadd.xlane.f32.xlu0 %v290_v28  ;;  %v294_v32 = vsel %vm289_vm0, %v293_v27, 0.0 }
  0x67   : > { %v298_v30 = vsel %vm289_vm0, %v297_v29, 0.0  ;;  %v301_v31 = vld [vmem:[#allocation5] sm:$0xf]  ;;  %v305_v33 = vld [vmem:[#allocation6] sm:$0xf] }
  0x68   : > { %299 = vadd.xlane.f32.xlu1 %v298_v30  ;;  %v302_v34 = vsel %vm289_vm0, %v301_v31, 0.0  ;;  %v306_v35 = vsel %vm289_vm0, %v305_v33, 0.0 }
  0x6a   : > { %295 = vadd.xlane.f32.xlu0 %v294_v32 }
  0x6c   : > { %303 = vadd.xlane.f32.xlu1 %v302_v34 }
  0x6e   : > { %307 = vadd.xlane.f32.xlu0 %v306_v35 }
  0xf3   : > { %v292_v36 = vpop.xlane.xlu0 %291 }
  0xf4   : > { %v310_v37 = vmul.f32 0.001953125, %v292_v36 }
  0xf5   : > { %v300_v38 = vpop.xlane.xlu1 %299 }
  0xf6   : > { %v312_v39 = vmul.f32 512.0, %v310_v37 }
  0xf7   : > { %v296_v40 = vpop.xlane.xlu0 %295 }
  0xf8   : > { %v311_v41 = vmul.f32 0.001953125, %v296_v40  ;;  %v313_v42 = vmul.f32 %v312_v39, %v310_v37 }
  0xf9   : > { %v304_v45 = vpop.xlane.xlu1 %303 }
  0xfa   : > { %v314_v43 = vsub.f32 %v300_v38, %v313_v42  ;;  %v316_v44 = vmul.f32 512.0, %v311_v41  ;;  %v320_v0 = vmul.f32 %v312_v39, %v311_v41 }
  0xfb   : > { %v308_v1 = vpop.xlane.xlu0 %307 }
  0xfc   : > { %v315_v46 = vmax.f32 %v314_v43, 0.0  ;;  %v317_v47 = vmul.f32 %v316_v44, %v311_v41  ;;  %v321_v3 = vsub.f32 %v308_v1, %v320_v0 }
  0xfe   : > { %v323_v48 = vmul.f32 0.0019569471, %v315_v46  ;;  %v318_v49 = vsub.f32 %v304_v45, %v317_v47  ;;  %v350_v6 = vmul.f32 2.0, %v321_v3 }
 0x100   : > { %546 = vrsqrt.f32 %v323_v48  ;;  %v319_v50 = vmax.f32 %v318_v49, 0.0  ;;  %vm326_vm1 = vcmp.eq.f32.partialorder %v323_v48, inf  ;;  %v329_v54 = vand.u32 2147483648, %v323_v48 }
 0x101   : > { %vm328_vm2 = vcmp.eq.f32.partialorder %v323_v48, 0.0 }
 0x102   : > { %v334_v51 = vmul.f32 0.0019569471, %v319_v50 }
 0x104   : > { %548 = vrsqrt.f32 %v334_v51  ;;  %vm337_vm3 = vcmp.eq.f32.partialorder %v334_v51, inf  ;;  %v340_v60 = vand.u32 2147483648, %v334_v51  ;;  %vm339_vm4 = vcmp.eq.f32.partialorder %v334_v51, 0.0 }
 0x10a   : > { %v547_v52 = vpop.eup %546 }
 0x10b   : > { %v325_v53 = vmul.f32 %v547_v52, %v323_v48 }
 0x10d   : > { %v327_v55 = vsel %vm326_vm1, %v323_v48, %v325_v53 }
 0x10e   : > { %v330_v56 = vsel %vm328_vm2, %v329_v54, %v327_v55  ;;  %v549_v57 = vpop.eup %548 }
 0x10f   : > { %v331_v58 = vadd.f32 1e-06, %v330_v56  ;;  %v336_v59 = vmul.f32 %v549_v57, %v334_v51 }
 0x111   : > { %550 = vrcp.f32 %v331_v58  ;;  %v338_v61 = vsel %vm337_vm3, %v334_v51, %v336_v59 }
 0x112   : > { %v341_v62 = vsel %vm339_vm4, %v340_v60, %v338_v61 }
 0x113   : > { %v342_v63 = vadd.f32 1e-06, %v341_v62 }
 0x115   : > { %552 = vrcp.f32 %v342_v63 }
 0x11b   : > { %v551_v2 = vpop.eup %550 }
 0x11c   : > { %v345_v4 = vmul.f32 %v551_v2, %v315_v46  ;;  %v351_v9 = vmul.f32 %v551_v2, %v350_v6 }
 0x11e   : > { %v346_v8 = vmul.f32 %v551_v2, %v345_v4 }
 0x11f   : > { %v553_v5 = vpop.eup %552 }
 0x120   : > { %v347_v7 = vmul.f32 %v553_v5, %v319_v50  ;;  %v352_v12 = vmul.f32 %v553_v5, %v351_v9 }
 0x122   : > { %v348_v10 = vmul.f32 %v553_v5, %v347_v7 }
 0x124   : > { %v349_v11 = vadd.f32 %v348_v10, %v346_v8 }
 0x126   : > { %v353_v13 = vsub.f32 %v349_v11, %v352_v12 }
 0x128   : > { %355 = vst.msk [vmem:[%s862_s2] sm:$0xf] %vm354_vm5, %v353_v13 }
 0x129 PF: > { %s18_s14 = sadd.s32 1, %s668_s14   ;;  %s872_s9 = smov %s652_s10 }
 0x12a   : > { %p15_p6 = scmp.ge.s32.totalorder %s18_s14, 4   ;;  %s873_s10 = smov %s656_s11 }
 0x12b   : > { %s874_s11 = smov %s737_s21  ;;  %s875_s12 = smov %s664_s13 }
 0x12c   : > { %s876_s13 = smov %s878_s16  ;;  %17 = sbr.rel (!%p15_p6) target bundleno = 6 (0x6), region = 91 }
 0x133   :  { %375 = vsyncpa [#allocation8], 1 }
 0x134   :  { %377 = vsyncpa [#allocation8 + $0x1], 1 }
 0x135   :  { %378 = vsyncpa [#allocation10], 1 }
 0x136   :  { %380 = vsyncpa [#allocation10 + $0x1], 1 }

</bundles_post_ra>
